<compile_context>
chip_gen: v7x
topology: tpu7x:2x2x1
jax: 0.10.0
libtpu: 0.0.40
codegen_flags: <defaults>
</compile_context>

<pallas_src>
import functools

import jax
import jax.numpy as jnp
from jax.experimental import pallas as pl
from jax.experimental.pallas import tpu as pltpu


def _round_up(x, m):
    return ((x + m - 1) // m) * m


def _sublane(dtype):
    """Second-to-last-dim tiling multiple for a dtype (sublane packing)."""
    size = jnp.dtype(dtype).itemsize
    if size >= 4:
        return 8
    if size == 2:
        return 16
    return 32


def _default_vmem_limit_bytes():
    """Generation-aware VMEM limit: big tiles on v5e/v6e, conservative on v7x."""
    cap = None
    try:
        info = pltpu.get_tpu_info()
        cap = getattr(info, "vmem_capacity_bytes", None)
    except Exception:
        cap = None
    if cap is None:
        cap = 64 * 1024 * 1024  # conservative fallback: assume v7x-sized VMEM
    if cap <= 64 * 1024 * 1024:
        # v7x: 64 MiB physical per TC; leave headroom for Mosaic internal scratch.
        return 44 * 1024 * 1024
    # v5e / v6e: 128 MiB physical VMEM.
    return 96 * 1024 * 1024


def _pick_tiles(batch, in_features, out_p, rank, dtype_bytes, sub, vmem_limit):
    """Pick (tm, tn): batch tile and out_features tile from a weight-aware budget."""
    # Double-buffered, VMEM-resident B^T and A^T blocks + scratch margin.
    weight_bytes = 2 * (in_features * rank + rank * out_p) * dtype_bytes
    margin = 2 * 1024 * 1024
    budget = max(vmem_limit - weight_bytes - margin, 1 * 1024 * 1024)

    def tm_for(tn):
        # Double-buffered x tile row + y tile row.
        per_row = 2 * (in_features + tn) * dtype_bytes
        tm = budget // max(per_row, 1)
        tm = (tm // sub) * sub
        return max(sub, min(1024, int(tm)))

    tn = out_p
    tm = tm_for(tn)
    # Very wide layers: tile out_features instead of shrinking the batch tile
    # below ~256 rows (tile-size sweeps: 256 rows ~63% of HBM roofline, 512 ~85%).
    if tm < 256 and out_p > 128:
        target_tm = 512
        tn_max = budget // (2 * target_tm * dtype_bytes) - in_features
        tn = min(out_p, max(128, (int(tn_max) // 128) * 128))
        tm = tm_for(tn)
    tm = min(tm, _round_up(batch, sub))
    return tm, tn


def _lora_kernel(x_ref, bt_ref, at_ref, o_ref, *, cast_intermediate):
    # t = x @ (B^T * scaling) -> (TM, rank).  Scaling was folded into B^T.
    t = jnp.dot(x_ref[...], bt_ref[...], preferred_element_type=jnp.float32)
    if cast_intermediate:  # bf16 MXU path for the second dot
        t = t.astype(at_ref.dtype)
    # y = t @ A^T -> (TM, TN); RHS is lane-dense over padded out_features.
    y = jnp.dot(t, at_ref[...], preferred_element_type=jnp.float32)
    o_ref[...] = y.astype(o_ref.dtype)


def _lora_add_kernel(x_ref, bt_ref, at_ref, base_ref, o_ref, *, cast_intermediate):
    # Fused residual: o = y_base + lora(x).  base is aliased with the output.
    t = jnp.dot(x_ref[...], bt_ref[...], preferred_element_type=jnp.float32)
    if cast_intermediate:
        t = t.astype(at_ref.dtype)
    y = jnp.dot(t, at_ref[...], preferred_element_type=jnp.float32)
    o_ref[...] = (base_ref[...].astype(jnp.float32) + y).astype(o_ref.dtype)


def single_lora_forward(x, A, B, *, alpha=1.0, rank=8, dropout_p=0.0,
                        training=False, y_base=None,
                        block_batch=None, block_out=None,
                        vmem_limit_bytes=None, use_core_parallel=False):
    """LoRA forward: y = (x @ B.T @ A.T) * (alpha / rank) [+ y_base].

    x: (batch, in_features); A: (out_features, rank); B: (rank, in_features).
    If y_base is given, it is fused into the output (aliased buffer).
    """
    batch, in_features = x.shape
    out_features, r = A.shape
    assert r == rank and B.shape == (rank, in_features)
    # Dropout is the identity in eval mode / p == 0.
    assert dropout_p == 0.0 or not training, (
        "TODO(synk): training-mode stochastic dropout (p>0) is not implemented")

    scaling = alpha / rank
    out_dtype = x.dtype
    # MXU compute dtype: bf16 stays bf16; everything else (incl. int8/fp8 inputs)
    # runs the matmuls in f32 to avoid a lossy intermediate downcast.
    compute_dtype = jnp.bfloat16 if x.dtype == jnp.bfloat16 else jnp.float32
    cast_intermediate = compute_dtype == jnp.bfloat16
    dtype_bytes = jnp.dtype(compute_dtype).itemsize
    sub = _sublane(compute_dtype)

    if vmem_limit_bytes is None:
        vmem_limit_bytes = _default_vmem_limit_bytes()

    # Lane-dense output: pad out_features up to a multiple of 128.
    out_p = _round_up(out_features, 128)

    tm_auto, tn_auto = _pick_tiles(batch, in_features, out_p, rank,
                                   dtype_bytes, sub, vmem_limit_bytes)
    tm = block_batch if block_batch is not None else tm_auto
    tn = block_out if block_out is not None else tn_auto
    assert tm % sub == 0, f"block_batch must be a multiple of {sub} for {compute_dtype}"
    assert tn % 128 == 0, "block_out must be a multiple of 128"

    out_p = _round_up(out_p, tn)
    batch_p = _round_up(batch, tm)

    # Pad batch so the grid divides evenly.
    x_p = x.astype(compute_dtype)
    if batch_p != batch:
        x_p = jnp.pad(x_p, ((0, batch_p - batch), (0, 0)))

    # Pre-transpose once in the wrapper; fold the LoRA scaling into B^T
    # (done once on the tiny weight, removes the per-tile VPU scale pass).
    B_t = (B.astype(jnp.float32).T * scaling).astype(compute_dtype)   # (in, rank)
    A_t = A.astype(compute_dtype).T                                   # (rank, out)
    if out_p != out_features:
        A_t = jnp.pad(A_t, ((0, 0), (0, out_p - out_features)))

    grid = (batch_p // tm, out_p // tn)

    x_spec = pl.BlockSpec((tm, in_features), lambda i, j: (i, 0))
    bt_spec = pl.BlockSpec((in_features, rank), lambda i, j: (0, 0))   # resident
    at_spec = pl.BlockSpec((rank, tn), lambda i, j: (0, j))            # resident per j
    out_spec = pl.BlockSpec((tm, tn), lambda i, j: (i, j))

    if use_core_parallel:
        # Explicit 2-TensorCore split of the batch axis (v7x).
        dim_sem = (pltpu.CORE_PARALLEL, pltpu.PARALLEL)
    else:
        dim_sem = ("parallel", "parallel")
    cparams = pltpu.CompilerParams(dimension_semantics=dim_sem,
                                   vmem_limit_bytes=vmem_limit_bytes)

    if y_base is None:
        kernel = functools.partial(_lora_kernel, cast_intermediate=cast_intermediate)
        y_p = pl.pallas_call(
            kernel,
            out_shape=jax.ShapeDtypeStruct((batch_p, out_p), out_dtype),
            grid_spec=pltpu.PrefetchScalarGridSpec(
                num_scalar_prefetch=0,
                grid=grid,
                in_specs=[x_spec, bt_spec, at_spec],
                out_specs=out_spec),
            compiler_params=cparams,
        )(x_p, B_t, A_t)
    else:
        assert y_base.shape == (batch, out_features)
        base_p = y_base.astype(out_dtype)
        if (batch_p, out_p) != (batch, out_features):
            base_p = jnp.pad(base_p, ((0, batch_p - batch), (0, out_p - out_features)))
        base_spec = pl.BlockSpec((tm, tn), lambda i, j: (i, j))
        kernel = functools.partial(_lora_add_kernel,
                                   cast_intermediate=cast_intermediate)
        y_p = pl.pallas_call(
            kernel,
            out_shape=jax.ShapeDtypeStruct((batch_p, out_p), out_dtype),
            grid_spec=pltpu.PrefetchScalarGridSpec(
                num_scalar_prefetch=0,
                grid=grid,
                in_specs=[x_spec, bt_spec, at_spec, base_spec],
                out_specs=out_spec),
            input_output_aliases={3: 0},   # y_base buffer is reused for the output
            compiler_params=cparams,
        )(x_p, B_t, A_t, base_p)

    # Strip batch / out_features padding.
    return y_p[:batch, :out_features]


if __name__ == "__main__":
    # Module hyperparameters (small, consistent with the forward pass).
    batch = 8
    in_features = 32
    out_features = 64
    rank = 8
    alpha = 1.0
    scaling = alpha / rank

    key = jax.random.PRNGKey(0)
    kx, ka, kb, kbase = jax.random.split(key, 4)

    x = jax.random.normal(kx, (batch, in_features), dtype=jnp.float32)

    # Case 1: exact module init (A = randn*0.02, B = zeros) -> output is zeros.
    A0 = jax.random.normal(ka, (out_features, rank), dtype=jnp.float32) * 0.02
    B0 = jnp.zeros((rank, in_features), dtype=jnp.float32)
    y0_ref = (A0 @ (B0 @ x.T)).T * scaling
    y0 = jax.block_until_ready(single_lora_forward(x, A0, B0, alpha=alpha, rank=rank))
    assert y0.shape == (batch, out_features)
    assert jnp.allclose(y0, y0_ref, atol=1e-6), "mismatch vs reference (zero-B init)"

    # Case 2: non-zero B to actually exercise the matmul path.
    A1 = A0
    B1 = jax.random.normal(kb, (rank, in_features), dtype=jnp.float32) * 0.1
    y1_ref = (A1 @ (B1 @ x.T)).T * scaling
    y1 = jax.block_until_ready(single_lora_forward(x, A1, B1, alpha=alpha, rank=rank))
    assert y1.shape == (batch, out_features)
    assert jnp.allclose(y1, y1_ref, atol=1e-5, rtol=1e-5), "mismatch vs reference"

    # Case 3: fused residual add (y_base aliased to the output buffer).
    y_base = jax.random.normal(kbase, (batch, out_features), dtype=jnp.float32)
    y2_ref = y_base + y1_ref
    y2 = jax.block_until_ready(
        single_lora_forward(x, A1, B1, alpha=alpha, rank=rank, y_base=y_base))
    assert y2.shape == (batch, out_features)
    assert jnp.allclose(y2, y2_ref, atol=1e-5, rtol=1e-5), "mismatch vs reference (base add)"

    print("KERNEL_OK")
</pallas_src>

<mosaic_0001>
module attributes {stable_mosaic.version = 11 : i64} {
  func.func @_lora_kernel(%arg0: i32, %arg1: i32, %arg2: memref<8x32xf32, #tpu.memory_space<vmem>>, %arg3: memref<32x8xf32, #tpu.memory_space<vmem>>, %arg4: memref<8x128xf32, #tpu.memory_space<vmem>>, %arg5: memref<8x128xf32, #tpu.memory_space<vmem>>) attributes {dimension_semantics = [#tpu.dimension_semantics<parallel>, #tpu.dimension_semantics<parallel>], iteration_bounds = array<i64: 1, 1>, scalar_prefetch = 0 : i64, scratch_operands = 0 : i64, tpu.core_type = #tpu.core_type<tc>, window_params = [{transform_indices = @transform_0, window_bounds = array<i64: 8, 32>}, {pipeline_mode = #tpu.pipeline_mode<synchronous>, transform_indices = @transform_1, window_bounds = array<i64: 32, 8>}, {transform_indices = @transform_2, window_bounds = array<i64: 8, 128>}, {transform_indices = @transform_3, window_bounds = array<i64: 8, 128>}]} {
    %c0 = arith.constant 0 : index
    %c0_0 = arith.constant 0 : index
    %0 = vector.load %arg2[%c0, %c0_0] : memref<8x32xf32, #tpu.memory_space<vmem>>, vector<8x32xf32>
    %c0_1 = arith.constant 0 : index
    %c0_2 = arith.constant 0 : index
    %1 = vector.load %arg3[%c0_1, %c0_2] : memref<32x8xf32, #tpu.memory_space<vmem>>, vector<32x8xf32>
    %cst = arith.constant dense<0.000000e+00> : vector<8x8xf32>
    %2 = tpu.matmul %0, %1, %cst {dimension_numbers = #tpu.dot_dimension_numbers<[1], [0], [0], [1], [0, 0, 1, 1], [], []>} : vector<8x32xf32>, vector<32x8xf32>, vector<8x8xf32> -> vector<8x8xf32>
    %c0_3 = arith.constant 0 : index
    %c0_4 = arith.constant 0 : index
    %3 = vector.load %arg4[%c0_3, %c0_4] : memref<8x128xf32, #tpu.memory_space<vmem>>, vector<8x128xf32>
    %cst_5 = arith.constant dense<0.000000e+00> : vector<8x128xf32>
    %4 = tpu.matmul %2, %3, %cst_5 {dimension_numbers = #tpu.dot_dimension_numbers<[1], [0], [0], [1], [0, 0, 1, 1], [], []>} : vector<8x8xf32>, vector<8x128xf32>, vector<8x128xf32> -> vector<8x128xf32>
    %c0_6 = arith.constant 0 : index
    %c0_7 = arith.constant 0 : index
    %5 = vector.load %arg5[%c0_6, %c0_7] : memref<8x128xf32, #tpu.memory_space<vmem>>, vector<8x128xf32>
    tpu.vector_store %arg5[%c0_6, %c0_7], %4 {strides = array<i32>} : memref<8x128xf32, #tpu.memory_space<vmem>>, vector<8x128xf32>,
    return
  }
  func.func @transform_0(%arg0: i32, %arg1: i32) -> (i32, i32) {
    %c0_i32 = arith.constant 0 : i32
    %c0_i32_0 = arith.constant 0 : i32
    return %arg0, %c0_i32 : i32, i32
  }
  func.func @transform_1(%arg0: i32, %arg1: i32) -> (i32, i32) {
    %c0_i32 = arith.constant 0 : i32
    %c0_i32_0 = arith.constant 0 : i32
    %c0_i32_1 = arith.constant 0 : i32
    return %c0_i32, %c0_i32_0 : i32, i32
  }
  func.func @transform_2(%arg0: i32, %arg1: i32) -> (i32, i32) {
    %c0_i32 = arith.constant 0 : i32
    %c0_i32_0 = arith.constant 0 : i32
    return %c0_i32, %arg1 : i32, i32
  }
  func.func @transform_3(%arg0: i32, %arg1: i32) -> (i32, i32) {
    %c0_i32 = arith.constant 0 : i32
    return %arg0, %arg1 : i32, i32
  }
}

</mosaic_0001>

<bundles_post_ra>
// kernel: tpu_custom_call.1
= control target key start
LH: loop header
LB: loop body
LE: loop exit
PB: predicated region body
PF: predicated region fallthrough
CT: control target
= control target key end

     0   :  { %v243_v3 = vmov 0.0|0.0   ;;  %vm244_vm0 = vmmov 0   ;;  %v245_v6 = vmov 0.0   ;;  %s297_s0 = inlined_call_operand.vmem [shape: f32[8,32], index: 0, kind: input, shape index: {}]   ;;  %s298_s1 = inlined_call_operand.vmem [shape: f32[32,8], index: 1, kind: input, shape index: {}]   ;;  %s299_s2 = inlined_call_operand.vmem [shape: f32[8,128], index: 2, kind: input, shape index: {}]   ;;  %s300_s3 = inlined_call_operand.hbm [shape: f32[8,128], index: 3, kind: output, shape index: {}]  }
   0x1   :  { %v16_v0 = vld [vmem:[%s298_s1] sm:$0xff]  ;;  %v17_v1 = vld [vmem:[%s298_s1 + $0x8] sm:$0xff]  ;;  %v18_v2 = vld [vmem:[%s298_s1 + $0x10] sm:$0xff]  ;;  %209 = vmatprep.subr.bf16.mxu0 %v243_v3  ;;  %201 = vmatprep.mubr.msk.f32.mxu0 %vm244_vm0, %v245_v6 }
   0x2   :  { %v210_v4 = vpack.c.bf16 %v17_v1, %v16_v0  ;;  %v19_v5 = vld [vmem:[%s298_s1 + $0x18] sm:$0xff] }
   0x3   :  { %8 = vsyncpa [#allocation3], 0  ;;  %204 = vmatprep.subr.mxu1 %v245_v6  ;;  %206 = vmatprep.mubr.msk.f32.mxu1 %vm244_vm0, %v245_v6  ;;  %v213_v7 = vpack.c.bf16 %v19_v5, %v18_v2  ;;  %v15_v8 = vld [vmem:[%s297_s0] sm:$0xff]  ;;  %vm20_vm1 = vcmask 261120   ;;  %vm95_vm2 = vcmask 64512   ;;  %s246_s1 = smov [#allocation2]  }
   0x4   :  { %211 = vmatpush3.bf16.msra.mxu0 %v210_v4  ;;  %v94_v9 = vld [vmem:[%s299_s2] sm:$0xff]  ;;  %s176_s24 = sshll.u32 %s246_s1, 4  ;;  %s177_s24 = int_to_ptr.vmem [resolvable:$true] %s176_s24 }
   0x5   :  { %212 = vmatprep.subr.bf16.mxu0 %v243_v3  ;;  %205 = vmatpush3.msra.mxu1 %v94_v9  ;;  %s219_s25 = scalar_lea.vmem %s177_s24, 128  ;;  %p224_p1 = scmp.lt.s32.totalorder %s177_s24, %s177_s24 }
   0x6   :  { %p220_p0 = scmp.ne.s32.totalorder %s177_s24, %s219_s25  ;;  %p225_p2 = scmp.lt.s32.totalorder %s219_s25, %s219_s25 }
   0x8   :  { %214 = vmatpush3.bf16.msra.mxu0 %v213_v7  ;;  %p226_p3 = por %p225_p2, %p224_p1 }
   0xa   :  { %p227_p4 = pnand %p226_p3, %p220_p0 }
   0xb   :  { %202 = vmatmul.mubr.msk.f32.vlgmr.msra.gmra.mrb[0].mxu0 %vm20_vm1, %v15_v8 }
  0xde   :  { %v90_v10 = vpop.f32.mrb[0].mxu0 }
  0xdf   :  { %v203_v11 = vpop.f32.mrb[1].mxu0  ;;  %207 = vmatmul.mubr.msk.f32.vlgmr.msra.gmra.mrb[0].mxu1 %vm95_vm2, %v90_v10 }
 0x1b2   :  { %v165_v12 = vpop.f32.mrb[0].mxu1 }
 0x1b3   :  { %169 = vst [vmem:[#allocation2] sm:$0xff] %v165_v12  ;;  %v208_v13 = vpop.f32.mrb[1].mxu1 }
 0x1b4   :  { %230 = shalt.err (!%p227_p4)
}
 0x1b5   :  { %s231_s26 = scalar_lea.hbm %s300_s3, 128 }
 0x1b6   :  { %p232_p5 = scmp.ne.s32.totalorder %s300_s3, %s231_s26  ;;  %p235_p6 = scmp.lt.u32.totalorder %s231_s26, %s300_s3 }
 0x1b8   :  { %p237_p7 = pnand %p235_p6, %p232_p5 }
 0x1ba   :  { %240 = shalt.err (!%p237_p7)
}
 0x1bb   :  { %179 = dma.vmem_to_hbm [thread:$0]  %s177_s24, 128, %s300_s3, [#allocation3]  }
 0x1bc   :  { %241 = dma.done.wait [#allocation3], 128  }
 0x1bd   :  { %242 = vsyncadd [#allocation3], 4294967168 }
 0x1be   :  { %183 = vsyncpa [#allocation3], 1 }

</bundles_post_ra>
